<compile_context>
chip_gen: v7x
topology: tpu7x:2x2x1
jax: 0.10.0
libtpu: 0.0.40
codegen_flags: <defaults>
</compile_context>

<pallas_src>
import jax
import jax.numpy as jnp
from jax.experimental import pallas as pl
from jax.experimental.pallas import tpu as pltpu


def mlp_kernel(x_ref, w1_ref, b1_ref, w2_ref, b2_ref, o_ref):
    # Cast x to bf16 in-kernel (hidden under the input DMA), accumulate in f32.
    xb = x_ref[...].astype(jnp.bfloat16)
    h = jnp.dot(xb, w1_ref[...], preferred_element_type=jnp.float32)
    h = jnp.maximum(h + b1_ref[...], 0.0)                       # bias + ReLU (VPU, f32)
    logits = jnp.dot(h.astype(jnp.bfloat16), w2_ref[...],
                     preferred_element_type=jnp.float32) + b2_ref[...]
    e = jnp.exp(-logits)                                        # EUP exp
    y = pl.reciprocal(1.0 + e, approx=True)                     # EUP vrcp (off the VALU)
    o_ref[...] = y.astype(o_ref.dtype)


def _round_up(n, m):
    return ((n + m - 1) // m) * m


def _cdiv(a, b):
    return -(-a // b)


def neural_net1_forward(x, w1, b1, w2, b2, *, block_batch=4096):
    """y = sigmoid(relu(x @ w1 + b1) @ w2 + b2), tiled over the batch dim."""
    batch, input_size = x.shape
    hidden = w1.shape[1]
    num_classes = w2.shape[1]

    # --- Batch tiling --------------------------------------------------------
    if batch <= block_batch:
        # Single grid step; a full-dim block is legal for any batch size.
        tb = batch
        steps = 1
    else:
        steps = _cdiv(batch, block_batch)
        if steps % 2 == 1:
            steps += 1                      # even #steps -> balanced v7x megacore split
        tb = _round_up(_cdiv(batch, steps), 8)   # non-full blocks must be 8-aligned
        steps = _cdiv(batch, tb)            # trailing partial block is masked by Pallas

    # --- Tiny resident weights as bf16 MXU operands; biases stay f32. -------
    w1b = w1.astype(jnp.bfloat16)
    w2b = w2.astype(jnp.bfloat16)

    out = pl.pallas_call(
        mlp_kernel,
        out_shape=jax.ShapeDtypeStruct((batch, num_classes), jnp.float32),
        grid=(steps,),
        in_specs=[
            pl.BlockSpec((tb, input_size), lambda i: (i, 0)),       # x tile (f32)
            pl.BlockSpec((input_size, hidden), lambda i: (0, 0)),   # W1 (resident, bf16)
            pl.BlockSpec((1, hidden), lambda i: (0, 0)),            # b1 (f32)
            pl.BlockSpec((hidden, num_classes), lambda i: (0, 0)),  # W2 (resident, bf16)
            pl.BlockSpec((1, num_classes), lambda i: (0, 0)),       # b2 (f32)
        ],
        out_specs=pl.BlockSpec((tb, num_classes), lambda i: (i, 0)),
        compiler_params=pltpu.CompilerParams(
            dimension_semantics=("parallel",),  # v7x megacore; no-op on v5e/v6e
        ),
    )(x, w1b, b1, w2b, b2)

    return out


def init_params(key, input_size, hidden_size, num_classes):
    # Mimic torch.nn.Linear default init: U(-1/sqrt(fan_in), 1/sqrt(fan_in)).
    k1, k2, k3, k4 = jax.random.split(key, 4)
    bound1 = 1.0 / jnp.sqrt(input_size)
    bound2 = 1.0 / jnp.sqrt(hidden_size)
    w1 = jax.random.uniform(k1, (input_size, hidden_size), jnp.float32, -bound1, bound1)
    b1 = jax.random.uniform(k2, (1, hidden_size), jnp.float32, -bound1, bound1)
    w2 = jax.random.uniform(k3, (hidden_size, num_classes), jnp.float32, -bound2, bound2)
    b2 = jax.random.uniform(k4, (1, num_classes), jnp.float32, -bound2, bound2)
    return w1, b1, w2, b2


def _reference(x, w1, b1, w2, b2):
    h = jnp.maximum(x @ w1 + b1, 0.0)
    return jax.nn.sigmoid(h @ w2 + b2)


if __name__ == "__main__":
    input_size, hidden_size, num_classes = 32, 64, 4
    key = jax.random.PRNGKey(0)
    kx, kp, kx2 = jax.random.split(key, 3)
    w1, b1, w2, b2 = init_params(kp, input_size, hidden_size, num_classes)

    # Small case (module-sized): single grid step, full arrays in VMEM.
    x = jax.random.normal(kx, (8, input_size), jnp.float32)
    y = neural_net1_forward(x, w1, b1, w2, b2)
    jax.block_until_ready(y)
    y_ref = _reference(x, w1, b1, w2, b2)
    # bf16 MXU operands + approx reciprocal -> loosened tolerance vs f32 reference.
    assert y.shape == (8, num_classes)
    assert jnp.allclose(y, y_ref, atol=2e-2), "small-batch mismatch vs reference"

    # Larger ragged batch exercising the multi-step (even, balanced) grid path
    # with a masked partial trailing block (no wrapper-side pad/slice).
    x_big = jax.random.normal(kx2, (1000, input_size), jnp.float32)
    y_big = neural_net1_forward(x_big, w1, b1, w2, b2, block_batch=256)
    jax.block_until_ready(y_big)
    y_big_ref = _reference(x_big, w1, b1, w2, b2)
    assert y_big.shape == (1000, num_classes)
    assert jnp.allclose(y_big, y_big_ref, atol=2e-2), "large-batch mismatch vs reference"

    print("KERNEL_OK")
</pallas_src>

<mosaic_0001>
module attributes {stable_mosaic.version = 11 : i64} {
  func.func @mlp_kernel(%arg0: i32, %arg1: memref<8x32xf32, #tpu.memory_space<vmem>>, %arg2: memref<32x64xbf16, #tpu.memory_space<vmem>>, %arg3: memref<1x64xf32, #tpu.memory_space<vmem>>, %arg4: memref<64x4xbf16, #tpu.memory_space<vmem>>, %arg5: memref<1x4xf32, #tpu.memory_space<vmem>>, %arg6: memref<8x4xf32, #tpu.memory_space<vmem>>) attributes {dimension_semantics = [#tpu.dimension_semantics<parallel>], iteration_bounds = array<i64: 1>, scalar_prefetch = 0 : i64, scratch_operands = 0 : i64, tpu.core_type = #tpu.core_type<tc>, window_params = [{transform_indices = @transform_0, window_bounds = array<i64: 8, 32>}, {pipeline_mode = #tpu.pipeline_mode<synchronous>, transform_indices = @transform_1, window_bounds = array<i64: 32, 64>}, {pipeline_mode = #tpu.pipeline_mode<synchronous>, transform_indices = @transform_2, window_bounds = array<i64: 1, 64>}, {pipeline_mode = #tpu.pipeline_mode<synchronous>, transform_indices = @transform_3, window_bounds = array<i64: 64, 4>}, {pipeline_mode = #tpu.pipeline_mode<synchronous>, transform_indices = @transform_4, window_bounds = array<i64: 1, 4>}, {transform_indices = @transform_5, window_bounds = array<i64: 8, 4>}]} {
    %c0 = arith.constant 0 : index
    %c0_0 = arith.constant 0 : index
    %0 = vector.load %arg1[%c0, %c0_0] : memref<8x32xf32, #tpu.memory_space<vmem>>, vector<8x32xf32>
    %1 = arith.truncf %0 : vector<8x32xf32> to vector<8x32xbf16>
    %c0_1 = arith.constant 0 : index
    %c0_2 = arith.constant 0 : index
    %2 = vector.load %arg2[%c0_1, %c0_2] : memref<32x64xbf16, #tpu.memory_space<vmem>>, vector<32x64xbf16>
    %cst = arith.constant dense<0.000000e+00> : vector<8x64xf32>
    %3 = tpu.matmul %1, %2, %cst {dimension_numbers = #tpu.dot_dimension_numbers<[1], [0], [0], [1], [0, 0, 1, 1], [], []>} : vector<8x32xbf16>, vector<32x64xbf16>, vector<8x64xf32> -> vector<8x64xf32>
    %c0_3 = arith.constant 0 : index
    %c0_4 = arith.constant 0 : index
    %4 = vector.load %arg3[%c0_3, %c0_4] : memref<1x64xf32, #tpu.memory_space<vmem>>, vector<1x64xf32>
    %5 = vector.broadcast %4 : vector<1x64xf32> to vector<8x64xf32>
    %6 = arith.addf %3, %5 : vector<8x64xf32>
    %cst_5 = arith.constant 0.000000e+00 : f32
    %7 = vector.broadcast %cst_5 : f32 to vector<8x64xf32>
    %8 = arith.maximumf %6, %7 : vector<8x64xf32>
    %9 = arith.truncf %8 : vector<8x64xf32> to vector<8x64xbf16>
    %c0_6 = arith.constant 0 : index
    %c0_7 = arith.constant 0 : index
    %10 = vector.load %arg4[%c0_6, %c0_7] : memref<64x4xbf16, #tpu.memory_space<vmem>>, vector<64x4xbf16>
    %cst_8 = arith.constant dense<0.000000e+00> : vector<8x4xf32>
    %11 = tpu.matmul %9, %10, %cst_8 {dimension_numbers = #tpu.dot_dimension_numbers<[1], [0], [0], [1], [0, 0, 1, 1], [], []>} : vector<8x64xbf16>, vector<64x4xbf16>, vector<8x4xf32> -> vector<8x4xf32>
    %c0_9 = arith.constant 0 : index
    %c0_10 = arith.constant 0 : index
    %12 = vector.load %arg5[%c0_9, %c0_10] : memref<1x4xf32, #tpu.memory_space<vmem>>, vector<1x4xf32>
    %13 = vector.broadcast %12 : vector<1x4xf32> to vector<8x4xf32>
    %14 = arith.addf %11, %13 : vector<8x4xf32>
    %cst_11 = arith.constant 0.000000e+00 : f32
    %15 = vector.broadcast %cst_11 : f32 to vector<8x4xf32>
    %16 = arith.subf %15, %14 : vector<8x4xf32>
    %17 = math.exp %16 : vector<8x4xf32>
    %cst_12 = arith.constant 1.000000e+00 : f32
    %18 = vector.broadcast %cst_12 : f32 to vector<8x4xf32>
    %19 = arith.addf %18, %17 : vector<8x4xf32>
    %20 = tpu.reciprocal %19 {approx = true} : vector<8x4xf32> -> vector<8x4xf32>
    %c0_13 = arith.constant 0 : index
    %c0_14 = arith.constant 0 : index
    %21 = vector.load %arg6[%c0_13, %c0_14] : memref<8x4xf32, #tpu.memory_space<vmem>>, vector<8x4xf32>
    tpu.vector_store %arg6[%c0_13, %c0_14], %20 {strides = array<i32>} : memref<8x4xf32, #tpu.memory_space<vmem>>, vector<8x4xf32>,
    return
  }
  func.func @transform_0(%arg0: i32) -> (i32, i32) {
    %c0_i32 = arith.constant 0 : i32
    %c0_i32_0 = arith.constant 0 : i32
    return %arg0, %c0_i32 : i32, i32
  }
  func.func @transform_1(%arg0: i32) -> (i32, i32) {
    %c0_i32 = arith.constant 0 : i32
    %c0_i32_0 = arith.constant 0 : i32
    %c0_i32_1 = arith.constant 0 : i32
    return %c0_i32, %c0_i32_0 : i32, i32
  }
  func.func @transform_2(%arg0: i32) -> (i32, i32) {
    %c0_i32 = arith.constant 0 : i32
    %c0_i32_0 = arith.constant 0 : i32
    %c0_i32_1 = arith.constant 0 : i32
    return %c0_i32, %c0_i32_0 : i32, i32
  }
  func.func @transform_3(%arg0: i32) -> (i32, i32) {
    %c0_i32 = arith.constant 0 : i32
    %c0_i32_0 = arith.constant 0 : i32
    %c0_i32_1 = arith.constant 0 : i32
    return %c0_i32, %c0_i32_0 : i32, i32
  }
  func.func @transform_4(%arg0: i32) -> (i32, i32) {
    %c0_i32 = arith.constant 0 : i32
    %c0_i32_0 = arith.constant 0 : i32
    %c0_i32_1 = arith.constant 0 : i32
    return %c0_i32, %c0_i32_0 : i32, i32
  }
  func.func @transform_5(%arg0: i32) -> (i32, i32) {
    %c0_i32 = arith.constant 0 : i32
    %c0_i32_0 = arith.constant 0 : i32
    return %arg0, %c0_i32 : i32, i32
  }
}

</mosaic_0001>

<bundles_post_ra>
// kernel: tpu_custom_call.1
= control target key start
LH: loop header
LB: loop body
LE: loop exit
PB: predicated region body
PF: predicated region fallthrough
CT: control target
= control target key end

     0   :  { %v236_v0 = vmov 0.0   ;;  %vm237_vm0 = vmmov 0   ;;  %vm46_vm1 = vcmask 261120   ;;  %vm131_vm2 = vcmask 523264   ;;  %s298_s1 = inlined_call_operand.vmem [shape: bf16[32,64], index: 1, kind: input, shape index: {}]   ;;  %s299_s0 = inlined_call_operand.vmem [shape: f32[8,32], index: 0, kind: input, shape index: {}]   ;;  %s300_s3 = inlined_call_operand.vmem [shape: bf16[64,4], index: 3, kind: input, shape index: {}]   ;;  %s301_s2 = inlined_call_operand.vmem [shape: f32[1,64], index: 2, kind: input, shape index: {}]   ;;  %s302_s4 = inlined_call_operand.vmem [shape: f32[1,4], index: 4, kind: input, shape index: {}]   ;;  %s303_s5 = inlined_call_operand.vmem [shape: f32[8,4], index: 5, kind: output, shape index: {}]  }
   0x1   :  { %204 = vmatprep.subr.bf16.mxu0 %v236_v0  ;;  %v226_v1 = vld [vmem:[%s298_s1] sm:$0xff]   ;;  %208 = vmatprep.mubr.msk.bf16.mxu0 %vm237_vm0, %v236_v0  ;;  %v227_v2 = vld [vmem:[%s298_s1 + $0x8] sm:$0xff]   ;;  %v230_v7 = vld [vmem:[%s300_s3 + $0x10] sm:$0xff]   ;;  %vm180_vm3 = vcmask 31744  }
   0x2   :  { %212 = vmatprep.subr.bf16.mxu1 %v236_v0  ;;  %220 = vmatprep.mubr.msk.bf16.mxu1 %vm237_vm0, %v236_v0  ;;  %v21_v3 = vld [vmem:[%s299_s0] sm:$0xff]  ;;  %v229_v5 = vld [vmem:[%s300_s3 + $0x8] sm:$0xff]   ;;  %v231_v8 = vld [vmem:[%s300_s3 + $0x18] sm:$0xff]  }
   0x3   :  { %205 = vmatpush3.bf16.msra.mxu0 %v226_v1  ;;  %v228_v4 = vld [vmem:[%s300_s3] sm:$0xff]   ;;  %v22_v6 = vpack.c.bf16 %v21_v3, %v21_v3 }
   0x4   :  { %206 = vmatprep.subr.bf16.mxu0 %v236_v0  ;;  %213 = vmatpush3.bf16.msra.mxu1 %v228_v4  ;;  %v186_v9 = vld [vmem:[%s301_s2] ss:$0 sm:$0xff] }
   0x5   :  { %214 = vmatprep.subr.bf16.mxu1 %v236_v0  ;;  %v190_v17 = vld [vmem:[%s302_s4] ss:$0 sm:$0xff] }
   0x7   :  { %207 = vmatpush3.bf16.msra.mxu0 %v227_v2 }
   0x8   :  { %215 = vmatpush3.bf16.msra.mxu1 %v229_v5 }
   0x9   :  { %216 = vmatprep.subr.bf16.mxu1 %v236_v0 }
   0xa   :  { %209 = vmatmul.mubr.msk.bf16.vlgmr.msra.gmra.mrb[0].mxu0 %vm46_vm1, %v22_v6 }
   0xc   :  { %217 = vmatpush3.bf16.msra.mxu1 %v230_v7 }
   0xd   :  { %218 = vmatprep.subr.bf16.mxu1 %v236_v0 }
  0x10   :  { %219 = vmatpush3.bf16.msra.mxu1 %v231_v8 }
  0xdd   :  { %v84_v10 = vpop.f32.mrb[0].mxu0 }
  0xde   :  { %v85_v11 = vadd.f32 %v186_v9, %v84_v10  ;;  %v210_v12 = vpop.f32.mrb[1].mxu0 }
  0xdf   :  { %v87_v13 = vpop.f32.mrb[2].mxu0 }
  0xe0   :  { %v90_v14 = vmax.f32 %v85_v11, 0.0  ;;  %v211_v15 = vpop.f32.mrb[3].mxu0 }
  0xe2   :  { %v91_v16 = vpack.c.bf16 %v90_v14, %v90_v14 }
  0xe4   :  { %221 = vmatmul.mubr.msk.bf16.vlgmr.msra.gmra.mrb[0].mxu1 %vm131_vm2, %v91_v16 }
 0x1b7   :  { %v169_v18 = vpop.f32.mrb[0].mxu1 }
 0x1b8   :  { %v170_v19 = vadd.f32 %v190_v17, %v169_v18  ;;  %v222_v20 = vpop.f32.mrb[1].mxu1 }
 0x1b9   :  { %v172_v21 = vpop.f32.mrb[2].mxu1 }
 0x1ba   :  { %v175_v22 = vsub.f32 0.0, %v170_v19  ;;  %v223_v23 = vpop.f32.mrb[3].mxu1 }
 0x1bc   :  { %v176_v24 = vmul.f32 1.442695, %v175_v22 }
 0x1be   :  { %232 = vpow2.f32 %v176_v24 }
 0x1c8   :  { %v233_v25 = vpop.eup %232 }
 0x1c9   :  { %v178_v26 = vadd.f32 1.0, %v233_v25 }
 0x1cb   :  { %234 = vrcp.f32 %v178_v26 }
 0x1d5   :  { %v235_v27 = vpop.eup %234 }
 0x1d6   :  { %181 = vst.msk [vmem:[%s303_s5] sm:$0xff] %vm180_vm3, %v235_v27 }

</bundles_post_ra>
